<compile_context>
chip_gen: v7x
topology: tpu7x:2x2x1
jax: 0.10.0
libtpu: 0.0.40
codegen_flags: <defaults>
</compile_context>

<pallas_src>
import functools

import jax
import jax.numpy as jnp
from jax.experimental import pallas as pl
from jax.experimental.pallas import tpu as pltpu


def _round_up(n, m):
    return ((n + m - 1) // m) * m


def _vmem_capacity_bytes():
    """Physical per-core VMEM; conservative 64 MiB (v7x) fallback."""
    try:
        info = pltpu.get_tpu_info()
        cap = getattr(info, "vmem_capacity_bytes", None)
        if cap:
            return int(cap)
    except Exception:
        pass
    return 64 * 1024 * 1024


def _plan_tiles(n_rows, width, x_itemsize, t_itemsize, user_tm):
    """Pick row tile + explicit scoped-VMEM limit from an honest footprint."""
    cap = _vmem_capacity_bytes()
    # Input-buffer + temp budget: <= ~60% of physical VMEM, never more than
    # 64 MiB (keeps v6e/v5e in the 24-64 MiB range, v7x under ~40 MiB).
    total_budget = min(int(cap * 0.6), 64 * 1024 * 1024)
    # 2 pipeline buffers per input (input dtype) + ~2 (tm, W) f32 temps
    # (exp / target*exp) that Mosaic materializes in VMEM.
    bytes_per_row = 2 * width * (x_itemsize + t_itemsize) + 2 * width * 4

    if user_tm is None:
        tm = total_budget // max(bytes_per_row, 1)
        # Keep >= 2 grid steps when there is enough work so the "parallel"
        # grid axis can be sharded across both v7x TensorCores.
        if n_rows > 8:
            tm = min(tm, _round_up(pl.cdiv(n_rows, 2), 8))
    else:
        tm = int(user_tm)

    tm = min(tm, _round_up(n_rows, 8))
    tm = max(8, (int(tm) // 8) * 8)

    footprint = tm * bytes_per_row + 2 * tm * 8 * 4 + (1 << 20)  # + out bufs + slack
    vmem_limit = int(min(cap * 0.85, 96 * 1024 * 1024,
                         max(footprint * 3 // 2, 32 * 1024 * 1024)))
    return tm, vmem_limit


def _mil_ce_kernel(x_ref, t_ref, o_ref, *, tm, n_valid_rows, r_fold, n_cls,
                   avg_positives):
    i = pl.program_id(0)

    x = x_ref[...].astype(jnp.float32)          # (tm, W) with W = r_fold * n_cls
    t = t_ref[...].astype(jnp.float32)

    lane = jax.lax.broadcasted_iota(jnp.int32, (tm, r_fold), 1)
    loss_blk = jnp.zeros((tm, r_fold), jnp.float32)

    # One segment of n_cls lanes per folded row; r_fold == 1 is the plain path.
    for r in range(r_fold):
        xs = x[:, r * n_cls:(r + 1) * n_cls]
        ts = t[:, r * n_cls:(r + 1) * n_cls]
        # Max-shifted, divide-free formulation; the shift cancels exactly so
        # this equals the (unshifted) torch math but never overflows exp.
        m = jnp.max(xs, axis=-1, keepdims=True)
        ex = jnp.exp(xs - m)
        s_all = jnp.sum(ex, axis=-1, keepdims=True)          # (tm, 1)
        s_pos = jnp.sum(ts * ex, axis=-1, keepdims=True)     # (tm, 1)
        loss_r = jnp.log(s_all) - jnp.log(s_pos)
        if avg_positives:
            loss_r = loss_r + jnp.log(jnp.sum(ts, axis=-1, keepdims=True) + 1e-6)
        loss_blk = jnp.where(lane == r, loss_r, loss_blk)

    # Mask the ragged last row tile so out-of-range block contents never leak.
    row = i * tm + jax.lax.broadcasted_iota(jnp.int32, (tm, 1), 0)
    loss_blk = jnp.where(row < n_valid_rows, loss_blk, 0.0)

    o_ref[...] = loss_blk


def mil_cross_entropy(x, target, *, weights=None, avg_positives=False,
                      reduction="mean", tm=None):
    """MILCrossEntropy.forward over the last dim; leading dims are flattened."""
    lead_shape = x.shape[:-1]
    n_cls = x.shape[-1]
    x2 = x.reshape(-1, n_cls)
    t2 = target.reshape(-1, n_cls)
    n_total = x2.shape[0]

    if n_total == 0:
        z = jnp.zeros((0,), jnp.float32)
        return 0.0 * z.sum() if reduction in ("mean", "sum") else z.reshape(lead_shape)

    # Small-C lane folding: pack r_fold rows per kernel row for lane density.
    r_fold = max(1, 128 // n_cls) if n_cls < 128 else 1
    if r_fold > 1:
        n_pad = _round_up(n_total, r_fold)
        if n_pad != n_total:
            x2 = jnp.pad(x2, ((0, n_pad - n_total), (0, 0)))
            t2 = jnp.pad(t2, ((0, n_pad - n_total), (0, 0)), constant_values=1)
        xk = x2.reshape(n_pad // r_fold, r_fold * n_cls)
        tk = t2.reshape(n_pad // r_fold, r_fold * n_cls)
    else:
        xk, tk = x2, t2
    n_rows, width = xk.shape

    tm, vmem_limit = _plan_tiles(n_rows, width,
                                 jnp.dtype(xk.dtype).itemsize,
                                 jnp.dtype(tk.dtype).itemsize, tm)
    grid = pl.cdiv(n_rows, tm)

    kernel = functools.partial(_mil_ce_kernel, tm=tm, n_valid_rows=n_rows,
                               r_fold=r_fold, n_cls=n_cls,
                               avg_positives=avg_positives)

    per_row = pl.pallas_call(
        kernel,
        out_shape=jax.ShapeDtypeStruct((n_rows, r_fold), jnp.float32),
        grid_spec=pltpu.PrefetchScalarGridSpec(
            num_scalar_prefetch=0,
            grid=(grid,),
            in_specs=[
                pl.BlockSpec((tm, width), lambda i: (i, 0)),   # logits tile
                pl.BlockSpec((tm, width), lambda i: (i, 0)),   # target tile
            ],
            out_specs=pl.BlockSpec((tm, r_fold), lambda i: (i, 0)),
        ),
        compiler_params=pltpu.CompilerParams(
            dimension_semantics=("parallel",),
            vmem_limit_bytes=vmem_limit),
    )(xk, tk)

    loss = per_row.reshape(-1)[:n_total]                       # (n_total,)
    if weights is not None:
        w = jnp.asarray(weights, jnp.float32)
        loss = loss * (w.reshape(-1) if w.size == loss.size else w)
    if reduction == "mean":
        return loss.mean()
    elif reduction == "sum":
        return loss.sum()
    return loss.reshape(lead_shape)


def _reference(x, target, avg_positives=False, weights=None, reduction="mean"):
    exp_logits = jnp.exp(x)
    probs = exp_logits / jnp.sum(exp_logits, axis=-1, keepdims=True)
    if avg_positives:
        loss = -jnp.log(jnp.sum(target * probs, axis=-1)
                        / (jnp.sum(target, axis=-1) + 1e-6))
    else:
        loss = -jnp.log(jnp.sum(target * probs, axis=-1))
    if weights is not None:
        loss = loss * weights
    return loss.mean() if reduction == "mean" else loss.sum()


def _make_inputs(key, n, c):
    kx, kl, km = jax.random.split(key, 3)
    x = jax.random.normal(kx, (n, c), dtype=jnp.float32)
    labels = jax.random.randint(kl, (n,), 0, c)
    # multi-hot target with >=1 positive per row (one-hot + random extras)
    target = jax.nn.one_hot(labels, c, dtype=jnp.float32)
    target = jnp.clip(
        target + (jax.random.uniform(km, (n, c)) > 0.7).astype(jnp.float32),
        0.0, 1.0)
    return x, target


if __name__ == "__main__":
    key = jax.random.PRNGKey(0)
    k1, k2, k3, kw = jax.random.split(key, 4)

    # Case 1: small-C fold path (C=16 -> 8 rows folded per kernel row), ragged
    # row count (20 % 8 != 0), default auto tile, mean reduction.
    x1, t1 = _make_inputs(k1, 20, 16)
    out1 = jax.block_until_ready(mil_cross_entropy(x1, t1))
    ref1 = _reference(x1, t1)
    assert jnp.allclose(out1, ref1, rtol=1e-5, atol=1e-5), (out1, ref1)

    # Case 2: fold path with a forced small tile -> multi-step grid,
    # avg_positives branch, sum reduction.
    x2, t2 = _make_inputs(k2, 128, 16)
    out2 = jax.block_until_ready(
        mil_cross_entropy(x2, t2, tm=8, avg_positives=True, reduction="sum"))
    ref2 = _reference(x2, t2, avg_positives=True, reduction="sum")
    assert jnp.allclose(out2, ref2, rtol=1e-5, atol=1e-4), (out2, ref2)

    # Case 3: non-folded path (C=128), multi-step grid with a ragged last
    # tile, per-row weights, mean reduction.
    x3, t3 = _make_inputs(k3, 40, 128)
    w3 = jax.random.uniform(kw, (40,), dtype=jnp.float32)
    out3 = jax.block_until_ready(mil_cross_entropy(x3, t3, weights=w3))
    ref3 = _reference(x3, t3, weights=w3)
    assert jnp.allclose(out3, ref3, rtol=1e-5, atol=1e-5), (out3, ref3)

    print("KERNEL_OK")
</pallas_src>

<mosaic_0001>
module attributes {stable_mosaic.version = 11 : i64} {
  func.func @_mil_ce_kernel(%arg0: i32, %arg1: memref<8x128xf32, #tpu.memory_space<vmem>>, %arg2: memref<8x128xf32, #tpu.memory_space<vmem>>, %arg3: memref<8x8xf32, #tpu.memory_space<vmem>>) attributes {dimension_semantics = [#tpu.dimension_semantics<parallel>], iteration_bounds = array<i64: 1>, scalar_prefetch = 0 : i64, scratch_operands = 0 : i64, tpu.core_type = #tpu.core_type<tc>, window_params = [{transform_indices = @transform_0, window_bounds = array<i64: 8, 128>}, {transform_indices = @transform_1, window_bounds = array<i64: 8, 128>}, {transform_indices = @transform_2, window_bounds = array<i64: 8, 8>}]} {
    %c0 = arith.constant 0 : index
    %c0_0 = arith.constant 0 : index
    %0 = vector.load %arg1[%c0, %c0_0] : memref<8x128xf32, #tpu.memory_space<vmem>>, vector<8x128xf32>
    %c0_1 = arith.constant 0 : index
    %c0_2 = arith.constant 0 : index
    %1 = vector.load %arg2[%c0_1, %c0_2] : memref<8x128xf32, #tpu.memory_space<vmem>>, vector<8x128xf32>
    %2 = tpu.iota {dimensions = array<i32: 1>} : vector<8x8xi32>
    %cst = arith.constant 0.000000e+00 : f32
    %3 = vector.broadcast %cst : f32 to vector<8x8xf32>
    %4 = vector.extract_strided_slice %0 {offsets = [0, 0], sizes = [8, 16], strides = [1, 1]} : vector<8x128xf32> to vector<8x16xf32>
    %5 = vector.extract_strided_slice %1 {offsets = [0, 0], sizes = [8, 16], strides = [1, 1]} : vector<8x128xf32> to vector<8x16xf32>
    %cst_3 = arith.constant dense<0xFF800000> : vector<8xf32>
    %6 = vector.multi_reduction <maximumf>, %4, %cst_3 [1] : vector<8x16xf32> to vector<8xf32>
    %7 = vector.shape_cast %6 : vector<8xf32> to vector<8x1xf32>
    %8 = vector.broadcast %7 : vector<8x1xf32> to vector<8x16xf32>
    %9 = arith.subf %4, %8 : vector<8x16xf32>
    %10 = math.exp %9 : vector<8x16xf32>
    %cst_4 = arith.constant dense<0.000000e+00> : vector<8xf32>
    %11 = vector.multi_reduction <add>, %10, %cst_4 [1] : vector<8x16xf32> to vector<8xf32>
    %12 = vector.shape_cast %11 : vector<8xf32> to vector<8x1xf32>
    %13 = arith.mulf %5, %10 : vector<8x16xf32>
    %cst_5 = arith.constant dense<0.000000e+00> : vector<8xf32>
    %14 = vector.multi_reduction <add>, %13, %cst_5 [1] : vector<8x16xf32> to vector<8xf32>
    %15 = vector.shape_cast %14 : vector<8xf32> to vector<8x1xf32>
    %16 = math.log %12 : vector<8x1xf32>
    %17 = math.log %15 : vector<8x1xf32>
    %18 = arith.subf %16, %17 : vector<8x1xf32>
    %c0_i32 = arith.constant 0 : i32
    %19 = vector.broadcast %c0_i32 : i32 to vector<8x8xi32>
    %20 = arith.cmpi eq, %2, %19 : vector<8x8xi32>
    %21 = vector.shape_cast %18 : vector<8x1xf32> to vector<8x1xf32>
    %22 = vector.broadcast %21 : vector<8x1xf32> to vector<8x8xf32>
    %23 = arith.select %20, %22, %3 : vector<8x8xi1>, vector<8x8xf32>
    %24 = vector.extract_strided_slice %0 {offsets = [0, 16], sizes = [8, 16], strides = [1, 1]} : vector<8x128xf32> to vector<8x16xf32>
    %25 = vector.extract_strided_slice %1 {offsets = [0, 16], sizes = [8, 16], strides = [1, 1]} : vector<8x128xf32> to vector<8x16xf32>
    %cst_6 = arith.constant dense<0xFF800000> : vector<8xf32>
    %26 = vector.multi_reduction <maximumf>, %24, %cst_6 [1] : vector<8x16xf32> to vector<8xf32>
    %27 = vector.shape_cast %26 : vector<8xf32> to vector<8x1xf32>
    %28 = vector.broadcast %27 : vector<8x1xf32> to vector<8x16xf32>
    %29 = arith.subf %24, %28 : vector<8x16xf32>
    %30 = math.exp %29 : vector<8x16xf32>
    %cst_7 = arith.constant dense<0.000000e+00> : vector<8xf32>
    %31 = vector.multi_reduction <add>, %30, %cst_7 [1] : vector<8x16xf32> to vector<8xf32>
    %32 = vector.shape_cast %31 : vector<8xf32> to vector<8x1xf32>
    %33 = arith.mulf %25, %30 : vector<8x16xf32>
    %cst_8 = arith.constant dense<0.000000e+00> : vector<8xf32>
    %34 = vector.multi_reduction <add>, %33, %cst_8 [1] : vector<8x16xf32> to vector<8xf32>
    %35 = vector.shape_cast %34 : vector<8xf32> to vector<8x1xf32>
    %36 = math.log %32 : vector<8x1xf32>
    %37 = math.log %35 : vector<8x1xf32>
    %38 = arith.subf %36, %37 : vector<8x1xf32>
    %c1_i32 = arith.constant 1 : i32
    %39 = vector.broadcast %c1_i32 : i32 to vector<8x8xi32>
    %40 = arith.cmpi eq, %2, %39 : vector<8x8xi32>
    %41 = vector.shape_cast %38 : vector<8x1xf32> to vector<8x1xf32>
    %42 = vector.broadcast %41 : vector<8x1xf32> to vector<8x8xf32>
    %43 = arith.select %40, %42, %23 : vector<8x8xi1>, vector<8x8xf32>
    %44 = vector.extract_strided_slice %0 {offsets = [0, 32], sizes = [8, 16], strides = [1, 1]} : vector<8x128xf32> to vector<8x16xf32>
    %45 = vector.extract_strided_slice %1 {offsets = [0, 32], sizes = [8, 16], strides = [1, 1]} : vector<8x128xf32> to vector<8x16xf32>
    %cst_9 = arith.constant dense<0xFF800000> : vector<8xf32>
    %46 = vector.multi_reduction <maximumf>, %44, %cst_9 [1] : vector<8x16xf32> to vector<8xf32>
    %47 = vector.shape_cast %46 : vector<8xf32> to vector<8x1xf32>
    %48 = vector.broadcast %47 : vector<8x1xf32> to vector<8x16xf32>
    %49 = arith.subf %44, %48 : vector<8x16xf32>
    %50 = math.exp %49 : vector<8x16xf32>
    %cst_10 = arith.constant dense<0.000000e+00> : vector<8xf32>
    %51 = vector.multi_reduction <add>, %50, %cst_10 [1] : vector<8x16xf32> to vector<8xf32>
    %52 = vector.shape_cast %51 : vector<8xf32> to vector<8x1xf32>
    %53 = arith.mulf %45, %50 : vector<8x16xf32>
    %cst_11 = arith.constant dense<0.000000e+00> : vector<8xf32>
    %54 = vector.multi_reduction <add>, %53, %cst_11 [1] : vector<8x16xf32> to vector<8xf32>
    %55 = vector.shape_cast %54 : vector<8xf32> to vector<8x1xf32>
    %56 = math.log %52 : vector<8x1xf32>
    %57 = math.log %55 : vector<8x1xf32>
    %58 = arith.subf %56, %57 : vector<8x1xf32>
    %c2_i32 = arith.constant 2 : i32
    %59 = vector.broadcast %c2_i32 : i32 to vector<8x8xi32>
    %60 = arith.cmpi eq, %2, %59 : vector<8x8xi32>
    %61 = vector.shape_cast %58 : vector<8x1xf32> to vector<8x1xf32>
    %62 = vector.broadcast %61 : vector<8x1xf32> to vector<8x8xf32>
    %63 = arith.select %60, %62, %43 : vector<8x8xi1>, vector<8x8xf32>
    %64 = vector.extract_strided_slice %0 {offsets = [0, 48], sizes = [8, 16], strides = [1, 1]} : vector<8x128xf32> to vector<8x16xf32>
    %65 = vector.extract_strided_slice %1 {offsets = [0, 48], sizes = [8, 16], strides = [1, 1]} : vector<8x128xf32> to vector<8x16xf32>
    %cst_12 = arith.constant dense<0xFF800000> : vector<8xf32>
    %66 = vector.multi_reduction <maximumf>, %64, %cst_12 [1] : vector<8x16xf32> to vector<8xf32>
    %67 = vector.shape_cast %66 : vector<8xf32> to vector<8x1xf32>
    %68 = vector.broadcast %67 : vector<8x1xf32> to vector<8x16xf32>
    %69 = arith.subf %64, %68 : vector<8x16xf32>
    %70 = math.exp %69 : vector<8x16xf32>
    %cst_13 = arith.constant dense<0.000000e+00> : vector<8xf32>
    %71 = vector.multi_reduction <add>, %70, %cst_13 [1] : vector<8x16xf32> to vector<8xf32>
    %72 = vector.shape_cast %71 : vector<8xf32> to vector<8x1xf32>
    %73 = arith.mulf %65, %70 : vector<8x16xf32>
    %cst_14 = arith.constant dense<0.000000e+00> : vector<8xf32>
    %74 = vector.multi_reduction <add>, %73, %cst_14 [1] : vector<8x16xf32> to vector<8xf32>
    %75 = vector.shape_cast %74 : vector<8xf32> to vector<8x1xf32>
    %76 = math.log %72 : vector<8x1xf32>
    %77 = math.log %75 : vector<8x1xf32>
    %78 = arith.subf %76, %77 : vector<8x1xf32>
    %c3_i32 = arith.constant 3 : i32
    %79 = vector.broadcast %c3_i32 : i32 to vector<8x8xi32>
    %80 = arith.cmpi eq, %2, %79 : vector<8x8xi32>
    %81 = vector.shape_cast %78 : vector<8x1xf32> to vector<8x1xf32>
    %82 = vector.broadcast %81 : vector<8x1xf32> to vector<8x8xf32>
    %83 = arith.select %80, %82, %63 : vector<8x8xi1>, vector<8x8xf32>
    %84 = vector.extract_strided_slice %0 {offsets = [0, 64], sizes = [8, 16], strides = [1, 1]} : vector<8x128xf32> to vector<8x16xf32>
    %85 = vector.extract_strided_slice %1 {offsets = [0, 64], sizes = [8, 16], strides = [1, 1]} : vector<8x128xf32> to vector<8x16xf32>
    %cst_15 = arith.constant dense<0xFF800000> : vector<8xf32>
    %86 = vector.multi_reduction <maximumf>, %84, %cst_15 [1] : vector<8x16xf32> to vector<8xf32>
    %87 = vector.shape_cast %86 : vector<8xf32> to vector<8x1xf32>
    %88 = vector.broadcast %87 : vector<8x1xf32> to vector<8x16xf32>
    %89 = arith.subf %84, %88 : vector<8x16xf32>
    %90 = math.exp %89 : vector<8x16xf32>
    %cst_16 = arith.constant dense<0.000000e+00> : vector<8xf32>
    %91 = vector.multi_reduction <add>, %90, %cst_16 [1] : vector<8x16xf32> to vector<8xf32>
    %92 = vector.shape_cast %91 : vector<8xf32> to vector<8x1xf32>
    %93 = arith.mulf %85, %90 : vector<8x16xf32>
    %cst_17 = arith.constant dense<0.000000e+00> : vector<8xf32>
    %94 = vector.multi_reduction <add>, %93, %cst_17 [1] : vector<8x16xf32> to vector<8xf32>
    %95 = vector.shape_cast %94 : vector<8xf32> to vector<8x1xf32>
    %96 = math.log %92 : vector<8x1xf32>
    %97 = math.log %95 : vector<8x1xf32>
    %98 = arith.subf %96, %97 : vector<8x1xf32>
    %c4_i32 = arith.constant 4 : i32
    %99 = vector.broadcast %c4_i32 : i32 to vector<8x8xi32>
    %100 = arith.cmpi eq, %2, %99 : vector<8x8xi32>
    %101 = vector.shape_cast %98 : vector<8x1xf32> to vector<8x1xf32>
    %102 = vector.broadcast %101 : vector<8x1xf32> to vector<8x8xf32>
    %103 = arith.select %100, %102, %83 : vector<8x8xi1>, vector<8x8xf32>
    %104 = vector.extract_strided_slice %0 {offsets = [0, 80], sizes = [8, 16], strides = [1, 1]} : vector<8x128xf32> to vector<8x16xf32>
    %105 = vector.extract_strided_slice %1 {offsets = [0, 80], sizes = [8, 16], strides = [1, 1]} : vector<8x128xf32> to vector<8x16xf32>
    %cst_18 = arith.constant dense<0xFF800000> : vector<8xf32>
    %106 = vector.multi_reduction <maximumf>, %104, %cst_18 [1] : vector<8x16xf32> to vector<8xf32>
    %107 = vector.shape_cast %106 : vector<8xf32> to vector<8x1xf32>
    %108 = vector.broadcast %107 : vector<8x1xf32> to vector<8x16xf32>
    %109 = arith.subf %104, %108 : vector<8x16xf32>
    %110 = math.exp %109 : vector<8x16xf32>
    %cst_19 = arith.constant dense<0.000000e+00> : vector<8xf32>
    %111 = vector.multi_reduction <add>, %110, %cst_19 [1] : vector<8x16xf32> to vector<8xf32>
    %112 = vector.shape_cast %111 : vector<8xf32> to vector<8x1xf32>
    %113 = arith.mulf %105, %110 : vector<8x16xf32>
    %cst_20 = arith.constant dense<0.000000e+00> : vector<8xf32>
    %114 = vector.multi_reduction <add>, %113, %cst_20 [1] : vector<8x16xf32> to vector<8xf32>
    %115 = vector.shape_cast %114 : vector<8xf32> to vector<8x1xf32>
    %116 = math.log %112 : vector<8x1xf32>
    %117 = math.log %115 : vector<8x1xf32>
    %118 = arith.subf %116, %117 : vector<8x1xf32>
    %c5_i32 = arith.constant 5 : i32
    %119 = vector.broadcast %c5_i32 : i32 to vector<8x8xi32>
    %120 = arith.cmpi eq, %2, %119 : vector<8x8xi32>
    %121 = vector.shape_cast %118 : vector<8x1xf32> to vector<8x1xf32>
    %122 = vector.broadcast %121 : vector<8x1xf32> to vector<8x8xf32>
    %123 = arith.select %120, %122, %103 : vector<8x8xi1>, vector<8x8xf32>
    %124 = vector.extract_strided_slice %0 {offsets = [0, 96], sizes = [8, 16], strides = [1, 1]} : vector<8x128xf32> to vector<8x16xf32>
    %125 = vector.extract_strided_slice %1 {offsets = [0, 96], sizes = [8, 16], strides = [1, 1]} : vector<8x128xf32> to vector<8x16xf32>
    %cst_21 = arith.constant dense<0xFF800000> : vector<8xf32>
    %126 = vector.multi_reduction <maximumf>, %124, %cst_21 [1] : vector<8x16xf32> to vector<8xf32>
    %127 = vector.shape_cast %126 : vector<8xf32> to vector<8x1xf32>
    %128 = vector.broadcast %127 : vector<8x1xf32> to vector<8x16xf32>
    %129 = arith.subf %124, %128 : vector<8x16xf32>
    %130 = math.exp %129 : vector<8x16xf32>
    %cst_22 = arith.constant dense<0.000000e+00> : vector<8xf32>
    %131 = vector.multi_reduction <add>, %130, %cst_22 [1] : vector<8x16xf32> to vector<8xf32>
    %132 = vector.shape_cast %131 : vector<8xf32> to vector<8x1xf32>
    %133 = arith.mulf %125, %130 : vector<8x16xf32>
    %cst_23 = arith.constant dense<0.000000e+00> : vector<8xf32>
    %134 = vector.multi_reduction <add>, %133, %cst_23 [1] : vector<8x16xf32> to vector<8xf32>
    %135 = vector.shape_cast %134 : vector<8xf32> to vector<8x1xf32>
    %136 = math.log %132 : vector<8x1xf32>
    %137 = math.log %135 : vector<8x1xf32>
    %138 = arith.subf %136, %137 : vector<8x1xf32>
    %c6_i32 = arith.constant 6 : i32
    %139 = vector.broadcast %c6_i32 : i32 to vector<8x8xi32>
    %140 = arith.cmpi eq, %2, %139 : vector<8x8xi32>
    %141 = vector.shape_cast %138 : vector<8x1xf32> to vector<8x1xf32>
    %142 = vector.broadcast %141 : vector<8x1xf32> to vector<8x8xf32>
    %143 = arith.select %140, %142, %123 : vector<8x8xi1>, vector<8x8xf32>
    %144 = vector.extract_strided_slice %0 {offsets = [0, 112], sizes = [8, 16], strides = [1, 1]} : vector<8x128xf32> to vector<8x16xf32>
    %145 = vector.extract_strided_slice %1 {offsets = [0, 112], sizes = [8, 16], strides = [1, 1]} : vector<8x128xf32> to vector<8x16xf32>
    %cst_24 = arith.constant dense<0xFF800000> : vector<8xf32>
    %146 = vector.multi_reduction <maximumf>, %144, %cst_24 [1] : vector<8x16xf32> to vector<8xf32>
    %147 = vector.shape_cast %146 : vector<8xf32> to vector<8x1xf32>
    %148 = vector.broadcast %147 : vector<8x1xf32> to vector<8x16xf32>
    %149 = arith.subf %144, %148 : vector<8x16xf32>
    %150 = math.exp %149 : vector<8x16xf32>
    %cst_25 = arith.constant dense<0.000000e+00> : vector<8xf32>
    %151 = vector.multi_reduction <add>, %150, %cst_25 [1] : vector<8x16xf32> to vector<8xf32>
    %152 = vector.shape_cast %151 : vector<8xf32> to vector<8x1xf32>
    %153 = arith.mulf %145, %150 : vector<8x16xf32>
    %cst_26 = arith.constant dense<0.000000e+00> : vector<8xf32>
    %154 = vector.multi_reduction <add>, %153, %cst_26 [1] : vector<8x16xf32> to vector<8xf32>
    %155 = vector.shape_cast %154 : vector<8xf32> to vector<8x1xf32>
    %156 = math.log %152 : vector<8x1xf32>
    %157 = math.log %155 : vector<8x1xf32>
    %158 = arith.subf %156, %157 : vector<8x1xf32>
    %c7_i32 = arith.constant 7 : i32
    %159 = vector.broadcast %c7_i32 : i32 to vector<8x8xi32>
    %160 = arith.cmpi eq, %2, %159 : vector<8x8xi32>
    %161 = vector.shape_cast %158 : vector<8x1xf32> to vector<8x1xf32>
    %162 = vector.broadcast %161 : vector<8x1xf32> to vector<8x8xf32>
    %163 = arith.select %160, %162, %143 : vector<8x8xi1>, vector<8x8xf32>
    %c8_i32 = arith.constant 8 : i32
    %164 = arith.muli %arg0, %c8_i32 : i32
    %165 = tpu.iota {dimensions = array<i32: 0>} : vector<8x1xi32>
    %166 = vector.broadcast %164 : i32 to vector<8x1xi32>
    %167 = arith.addi %166, %165 : vector<8x1xi32>
    %c3_i32_27 = arith.constant 3 : i32
    %168 = vector.broadcast %c3_i32_27 : i32 to vector<8x1xi32>
    %169 = arith.cmpi slt, %167, %168 : vector<8x1xi32>
    %cst_28 = arith.constant 0.000000e+00 : f32
    %170 = vector.shape_cast %169 : vector<8x1xi1> to vector<8x1xi1>
    %171 = vector.broadcast %170 : vector<8x1xi1> to vector<8x8xi1>
    %172 = vector.broadcast %cst_28 : f32 to vector<8x8xf32>
    %173 = arith.select %171, %163, %172 : vector<8x8xi1>, vector<8x8xf32>
    %c0_29 = arith.constant 0 : index
    %c0_30 = arith.constant 0 : index
    %174 = vector.load %arg3[%c0_29, %c0_30] : memref<8x8xf32, #tpu.memory_space<vmem>>, vector<8x8xf32>
    tpu.vector_store %arg3[%c0_29, %c0_30], %173 {strides = array<i32>} : memref<8x8xf32, #tpu.memory_space<vmem>>, vector<8x8xf32>,
    return
  }
  func.func @transform_0(%arg0: i32) -> (i32, i32) {
    %c0_i32 = arith.constant 0 : i32
    %c0_i32_0 = arith.constant 0 : i32
    return %arg0, %c0_i32 : i32, i32
  }
  func.func @transform_1(%arg0: i32) -> (i32, i32) {
    %c0_i32 = arith.constant 0 : i32
    %c0_i32_0 = arith.constant 0 : i32
    return %arg0, %c0_i32 : i32, i32
  }
  func.func @transform_2(%arg0: i32) -> (i32, i32) {
    %c0_i32 = arith.constant 0 : i32
    %c0_i32_0 = arith.constant 0 : i32
    return %arg0, %c0_i32 : i32, i32
  }
}

</mosaic_0001>

<bundles_post_ra>
// kernel: tpu_custom_call.1
= control target key start
LH: loop header
LB: loop body
LE: loop exit
PB: predicated region body
PF: predicated region fallthrough
CT: control target
= control target key end

     0   :  { %7 = vsyncpa [#allocation3], 0  ;;  %s536_s0 = inlined_call_operand.hbm [shape: f32[3,128], index: 0, kind: input, shape index: {}]   ;;  %s537_s1 = inlined_call_operand.hbm [shape: f32[3,128], index: 1, kind: input, shape index: {}]   ;;  %s538_s2 = inlined_call_operand.hbm [shape: f32[3,8], index: 2, kind: output, shape index: {}]  }
   0x1   :  { %8 = vsyncpa [#allocation6], 0 }
   0x2   :  { %9 = vsyncpa [#allocation4], 0 }
   0x3   :  { %14 = vsyncadd [#allocation3], 64  ;;  %s428_s9 = smov [#allocation2]   ;;  %s356_s13 = scalar_lea.hbm %s536_s0, 64 }
   0x4   :  { %s15_s10 = sshll.u32 %s428_s9, 4  ;;  %p357_p0 = scmp.ne.s32.totalorder %s536_s0, %s356_s13  ;;  %s16_s10 = int_to_ptr.vmem [resolvable:$true] %s15_s10 }
   0x5   :  { %p360_p1 = scmp.lt.u32.totalorder %s356_s13, %s536_s0 }
   0x7   :  { %p362_p2 = pnand %p360_p1, %p357_p0 }
   0x9   :  { %365 = shalt.err (!%p362_p2)
}
   0xa   :  { %s366_s18 = scalar_lea.vmem %s16_s10, 64  ;;  %s370_s19 = scalar_lea.vmem %s16_s10, 128 }
   0xb   :  { %p367_p3 = scmp.ne.s32.totalorder %s16_s10, %s366_s18  ;;  %p371_p4 = scmp.lt.s32.totalorder %s16_s10, %s16_s10 }
   0xc   :  { %p372_p5 = scmp.lt.s32.totalorder %s370_s19, %s366_s18 }
   0xe   :  { %p373_p6 = por %p372_p5, %p371_p4 }
  0x10   :  { %p374_p7 = pnand %p373_p6, %p367_p3 }
  0x12   :  { %377 = shalt.err (!%p374_p7)
}
  0x13   :  { %s429_s20 = smov 64   ;;  %s430_s21 = smov 4  }
  0x14   :  { %21 = dma.hbm_to_vmem [thread:$0]  %s536_s0, 64, %s16_s10, [#allocation3], %s429_s20, %s429_s20, %s430_s21  }
  0x15   :  { %26 = vsyncadd [#allocation6], 64  ;;  %s431_s24 = smov [#allocation5]   ;;  %s378_s28 = scalar_lea.hbm %s537_s1, 64 }
  0x16   :  { %s27_s25 = sshll.u32 %s431_s24, 4  ;;  %p379_p8 = scmp.ne.s32.totalorder %s537_s1, %s378_s28  ;;  %s28_s25 = int_to_ptr.vmem [resolvable:$true] %s27_s25 }
  0x17   :  { %p382_p9 = scmp.lt.u32.totalorder %s378_s28, %s537_s1 }
  0x19   :  { %p384_p10 = pnand %p382_p9, %p379_p8 }
  0x1b   :  { %387 = shalt.err (!%p384_p10)
}
  0x1c   :  { %s388_s5 = scalar_lea.vmem %s28_s25, 64  ;;  %s392_s0 = scalar_lea.vmem %s28_s25, 128 }
  0x1d   :  { %p389_p11 = scmp.ne.s32.totalorder %s28_s25, %s388_s5  ;;  %p393_p12 = scmp.lt.s32.totalorder %s28_s25, %s28_s25 }
  0x1e   :  { %p394_p13 = scmp.lt.s32.totalorder %s392_s0, %s388_s5 }
  0x20   :  { %p395_p0 = por %p394_p13, %p393_p12 }
  0x22   :  { %p396_p1 = pnand %p395_p0, %p389_p11 }
  0x24   :  { %399 = shalt.err (!%p396_p1)
}
  0x25   :  { %33 = dma.hbm_to_vmem [thread:$0]  %s537_s1, 64, %s28_s25, [#allocation6], %s429_s20, %s429_s20, %s430_s21  }
  0x26   :  { %422 = dma.done.wait [#allocation3], 128  }
  0x27   :  { %423 = vsyncadd [#allocation3], 4294967168 }
  0x28   :  { %424 = dma.done.wait [#allocation6], 128  }
  0x29   :  { %425 = vsyncadd [#allocation6], 4294967168  ;;  %vm65_vm0 = vcmask 261248   ;;  %vm44_vm1 = vcmask 130048   ;;  %v484_v0 = vld [vmem:[#allocation2] sm:$0xff]  ;;  %vm94_vm2 = vcmask 392448  }
  0x2a   :  { %vm123_vm3 = vcmask 523648   ;;  %v66_v1 = vsel %vm65_vm0, %v484_v0, -inf  ;;  %v45_v2 = vsel %vm44_vm1, %v484_v0, -inf  ;;  %v95_v3 = vsel %vm94_vm2, %v484_v0, -inf  ;;  %v41_v25 = vld [vmem:[#allocation5] sm:$0xff]  ;;  %s432_s1 = smov 112  }
  0x2b   :  { %67 = vmax.xlane.f32.xlu1 %v66_v1  ;;  %46 = vmax.xlane.f32.xlu0 %v45_v2  ;;  %v124_v4 = vsel %vm123_vm3, %v484_v0, -inf  ;;  %vm152_vm4 = vcmask 654848   ;;  %vm181_vm5 = vcmask 786048   ;;  %vm210_vm6 = vcmask 917248   ;;  %s433_s8 = smov 96   ;;  %s434_s9 = smov 80  }
  0x2c   :  { %v153_v5 = vsel %vm152_vm4, %v484_v0, -inf  ;;  %v182_v6 = vsel %vm181_vm5, %v484_v0, -inf  ;;  %v211_v7 = vsel %vm210_vm6, %v484_v0, -inf  ;;  %vm239_vm7 = vcmask 1048448   ;;  %s435_s10 = smov 48   ;;  %s436_s11 = smov 32  }
  0x2d   :  { %v240_v8 = vsel %vm239_vm7, %v484_v0, -inf  ;;  %s437_s12 = smov 16  }
  0x2f   :  { %96 = vmax.xlane.f32.xlu0 %v95_v3  ;;  %125 = vmax.xlane.f32.xlu1 %v124_v4 }
  0x33   :  { %154 = vmax.xlane.f32.xlu0 %v153_v5  ;;  %183 = vmax.xlane.f32.xlu1 %v182_v6 }
  0x37   :  { %212 = vmax.xlane.f32.xlu0 %v211_v7 }
  0x3b   :  { %241 = vmax.xlane.f32.xlu0 %v240_v8 }
  0xb8   :  { %v68_v9 = vpop.xlane.xlu1 %67  ;;  %v47_v10 = vpop.xlane.xlu0 %46 }
  0xb9   :  { %v69_v11 = vsub.f32 %v484_v0, %v68_v9  ;;  %v48_v44 = vsub.f32 %v484_v0, %v47_v10 }
  0xbb   :  { %v70_v12 = vmul.f32 1.442695, %v69_v11  ;;  %v49_v45 = vmul.f32 1.442695, %v48_v44 }
  0xbc   :  { %v97_v13 = vpop.xlane.xlu0 %96  ;;  %v126_v14 = vpop.xlane.xlu1 %125 }
  0xbd   :  { %308 = vpow2.f32 %v70_v12  ;;  %v98_v15 = vsub.f32 %v484_v0, %v97_v13  ;;  %v127_v16 = vsub.f32 %v484_v0, %v126_v14 }
  0xbf   :  { %v99_v17 = vmul.f32 1.442695, %v98_v15  ;;  %v128_v18 = vmul.f32 1.442695, %v127_v16 }
  0xc0   :  { %v155_v19 = vpop.xlane.xlu0 %154  ;;  %v184_v20 = vpop.xlane.xlu1 %183 }
  0xc1   :  { %310 = vpow2.f32 %v99_v17  ;;  %v156_v21 = vsub.f32 %v484_v0, %v155_v19  ;;  %v185_v23 = vsub.f32 %v484_v0, %v184_v20 }
  0xc2   :  { %312 = vpow2.f32 %v128_v18 }
  0xc3   :  { %v157_v22 = vmul.f32 1.442695, %v156_v21  ;;  %v186_v28 = vmul.f32 1.442695, %v185_v23 }
  0xc4   :  { %v213_v24 = vpop.xlane.xlu0 %212 }
  0xc5   :  { %314 = vpow2.f32 %v157_v22  ;;  %v214_v26 = vsub.f32 %v484_v0, %v213_v24 }
  0xc6   :  { %316 = vpow2.f32 %v186_v28 }
  0xc7   :  { %v309_v27 = vpop.eup %308  ;;  %v215_v30 = vmul.f32 1.442695, %v214_v26 }
  0xc8   :  { %73 = vrot.lane.b32.xlu0 %v309_v27, %s432_s1  ;;  %v79_v29 = vmul.f32 %v309_v27, %v41_v25  ;;  %v242_v31 = vpop.xlane.xlu0 %241 }
  0xc9   :  { %318 = vpow2.f32 %v215_v30  ;;  %v243_v35 = vsub.f32 %v484_v0, %v242_v31 }
  0xca   :  { %81 = vrot.lane.b32.xlu1 %v79_v29, %s432_s1 }
  0xcb   :  { %v311_v32 = vpop.eup %310  ;;  %v244_v38 = vmul.f32 1.442695, %v243_v35 }
  0xcc   :  { %v313_v33 = vpop.eup %312  ;;  %102 = vrot.lane.b32.xlu0 %v311_v32, %s433_s8  ;;  %v108_v34 = vmul.f32 %v311_v32, %v41_v25  ;;  %v42_v32 = vlaneseq }
  0xcd   :  { %v137_v36 = vmul.f32 %v313_v33, %v41_v25  ;;  %320 = vpow2.f32 %v244_v38 }
  0xce   :  { %110 = vrot.lane.b32.xlu1 %v108_v34, %s433_s8  ;;  %322 = vpow2.f32 %v49_v45 }
  0xcf   :  { %v315_v37 = vpop.eup %314 }
  0xd0   :  { %131 = vrot.lane.b32.xlu0 %v313_v33, %s434_s9  ;;  %v166_v39 = vmul.f32 %v315_v37, %v41_v25  ;;  %v317_v40 = vpop.eup %316 }
  0xd1   :  { %v195_v50 = vmul.f32 %v317_v40, %v41_v25 }
  0xd2   :  { %139 = vrot.lane.b32.xlu1 %v137_v36, %s434_s9 }
  0xd3   :  { %v319_v41 = vpop.eup %318 }
  0xd4   :  { %160 = vrot.lane.b32.xlu0 %v315_v37, %s429_s20  ;;  %v224_v42 = vmul.f32 %v319_v41, %v41_v25 }
  0xd6   :  { %168 = vrot.lane.b32.xlu1 %v166_v39, %s429_s20 }
  0xd7   :  { %v321_v43 = vpop.eup %320 }
  0xd8   :  { %189 = vrot.lane.b32.xlu0 %v317_v40, %s435_s10  ;;  %v323_v46 = vpop.eup %322  ;;  %v253_v51 = vmul.f32 %v321_v43, %v41_v25  ;;  %v43_v40 = vand.u32 127, %v42_v32 }
  0xd9   :  { %v51_v47 = vsel %vm44_vm1, %v323_v46, 0.0  ;;  %v54_v48 = vmul.f32 %v323_v46, %v41_v25 }
  0xda   :  { %218 = vrot.lane.b32.xlu1 %v319_v41, %s436_s11  ;;  %vm63_vm8 = vcmp.eq.s32.totalorder %v43_v40, 0  ;;  %vm92_vm9 = vcmp.eq.s32.totalorder %v43_v40, 1  ;;  %vm121_vm10 = vcmp.eq.s32.totalorder %v43_v40, 2  ;;  %vm150_vm11 = vcmp.eq.s32.totalorder %v43_v40, 3 }
  0xdb   :  { %v55_v49 = vsel %vm44_vm1, %v54_v48, 0.0  ;;  %vm179_vm12 = vcmp.eq.s32.totalorder %v43_v40, 4  ;;  %vm208_vm13 = vcmp.eq.s32.totalorder %v43_v40, 5  ;;  %vm237_vm14 = vcmp.eq.s32.totalorder %v43_v40, 6 }
  0xdc   :  { %vm266_vm15 = vcmp.eq.s32.totalorder %v43_v40, 7 }
  0xde   :  { %226 = vrot.lane.b32.xlu1 %v224_v42, %s436_s11 }
  0xe2   :  { %247 = vrot.lane.b32.xlu1 %v321_v43, %s437_s12 }
  0xf7   :  { %52 = vadd.xlane.f32.xlu0 %v51_v47 }
 0x106   :  { %56 = vadd.xlane.f32.xlu1 %v55_v49 }
 0x10d   :  { %197 = vrot.lane.b32.xlu0 %v195_v50, %s435_s10 }
 0x111   :  { %255 = vrot.lane.b32.xlu0 %v253_v51, %s437_s12 }
 0x13a   :  { %v74_v52 = vpop.permute.xlu0 %73 }
 0x13b   :  { %v76_v53 = vsel %vm44_vm1, %v74_v52, 0.0 }
 0x13c   :  { %v82_v54 = vpop.permute.xlu1 %81  ;;  %77 = vadd.xlane.f32.xlu1 %v76_v53 }
 0x13d   :  { %v84_v0 = vsel %vm44_vm1, %v82_v54, 0.0 }
 0x13e   :  { %v103_v55 = vpop.permute.xlu0 %102 }
 0x13f   :  { %v105_v56 = vsel %vm44_vm1, %v103_v55, 0.0 }
 0x140   :  { %v111_v57 = vpop.permute.xlu1 %110  ;;  %106 = vadd.xlane.f32.xlu1 %v105_v56 }
 0x141   :  { %v113_v4 = vsel %vm44_vm1, %v111_v57, 0.0 }
 0x142   :  { %v132_v58 = vpop.permute.xlu0 %131 }
 0x143   :  { %v134_v59 = vsel %vm44_vm1, %v132_v58, 0.0 }
 0x144   :  { %135 = vadd.xlane.f32.xlu1 %v134_v59  ;;  %v140_v60 = vpop.permute.xlu1 %139 }
 0x145   :  { %v142_v6 = vsel %vm44_vm1, %v140_v60, 0.0 }
 0x146   :  { %v161_v61 = vpop.permute.xlu0 %160 }
 0x147   :  { %v163_v62 = vsel %vm44_vm1, %v161_v61, 0.0 }
 0x148   :  { %164 = vadd.xlane.f32.xlu1 %v163_v62  ;;  %v169_v2 = vpop.permute.xlu1 %168 }
 0x149   :  { %v171_v3 = vsel %vm44_vm1, %v169_v2, 0.0 }
 0x14a   :  { %v190_v63 = vpop.permute.xlu0 %189 }
 0x14b   :  { %v192_v1 = vsel %vm44_vm1, %v190_v63, 0.0 }
 0x14c   :  { %85 = vadd.xlane.f32.xlu1 %v84_v0  ;;  %193 = vadd.xlane.f32.xlu0 %v192_v1  ;;  %v219_v5 = vpop.permute.xlu1 %218 }
 0x14d   :  { %v221_v7 = vsel %vm44_vm1, %v219_v5, 0.0 }
 0x150   :  { %172 = vadd.xlane.f32.xlu1 %v171_v3  ;;  %114 = vadd.xlane.f32.xlu0 %v113_v4  ;;  %v227_v8 = vpop.permute.xlu1 %226 }
 0x151   :  { %v229_v9 = vsel %vm44_vm1, %v227_v8, 0.0 }
 0x154   :  { %143 = vadd.xlane.f32.xlu0 %v142_v6  ;;  %v248_v10 = vpop.permute.xlu1 %247 }
 0x155   :  { %v250_v11 = vsel %vm44_vm1, %v248_v10, 0.0 }
 0x158   :  { %222 = vadd.xlane.f32.xlu0 %v221_v7 }
 0x15c   :  { %230 = vadd.xlane.f32.xlu0 %v229_v9  ;;  %v270_v9 = vshrl.u32 %v42_v32, 7 }
 0x15e   :  { %vm273_vm0 = vcmp.lt.s32.totalorder %v270_v9, 3 }
 0x160   :  { %251 = vadd.xlane.f32.xlu0 %v250_v11 }
 0x184   :  { %v53_v12 = vpop.xlane.xlu0 %52 }
 0x185   :  { %324 = vlog2.f32 %v53_v12 }
 0x188   :  { %v198_v13 = vpop.permute.xlu0 %197 }
 0x189   :  { %v200_v14 = vsel %vm44_vm1, %v198_v13, 0.0 }
 0x18a   :  { %201 = vadd.xlane.f32.xlu1 %v200_v14 }
 0x18c   :  { %v256_v15 = vpop.permute.xlu0 %255 }
 0x18d   :  { %v258_v16 = vsel %vm44_vm1, %v256_v15, 0.0  ;;  %vm277_vm1 = vcmask 64512  }
 0x18e   :  { %259 = vadd.xlane.f32.xlu1 %v258_v16 }
 0x18f   :  { %v325_v28 = vpop.eup %324 }
 0x190   :  { %v59_v43 = vmul.f32 0.6931472, %v325_v28 }
 0x193   :  { %v57_v17 = vpop.xlane.xlu1 %56 }
 0x194   :  { %326 = vlog2.f32 %v57_v17 }
 0x19e   :  { %v327_v30 = vpop.eup %326 }
 0x19f   :  { %v61_v38 = vmul.f32 0.6931472, %v327_v30 }
 0x1a1   :  { %v62_v48 = vsub.f32 %v59_v43, %v61_v38 }
 0x1a3   :  { %v64_v58 = vsel %vm63_vm8, %v62_v48, 0.0 }
 0x1c9   :  { %v78_v18 = vpop.xlane.xlu1 %77 }
 0x1ca   :  { %328 = vlog2.f32 %v78_v18 }
 0x1cd   :  { %v107_v19 = vpop.xlane.xlu1 %106 }
 0x1d1   :  { %v136_v20 = vpop.xlane.xlu1 %135 }
 0x1d4   :  { %v329_v31 = vpop.eup %328 }
 0x1d5   :  { %v165_v22 = vpop.xlane.xlu1 %164  ;;  %v88_v45 = vmul.f32 0.6931472, %v329_v31 }
 0x1d9   :  { %v194_v21 = vpop.xlane.xlu0 %193  ;;  %v86_v24 = vpop.xlane.xlu1 %85 }
 0x1da   :  { %330 = vlog2.f32 %v86_v24 }
 0x1dd   :  { %v115_v23 = vpop.xlane.xlu0 %114  ;;  %v173_v27 = vpop.xlane.xlu1 %172 }
 0x1de   :  { %332 = vlog2.f32 %v115_v23 }
 0x1e1   :  { %v144_v25 = vpop.xlane.xlu0 %143 }
 0x1e2   :  { %334 = vlog2.f32 %v144_v25 }
 0x1e3   :  { %336 = vlog2.f32 %v107_v19 }
 0x1e4   :  { %338 = vlog2.f32 %v136_v20  ;;  %v331_v33 = vpop.eup %330 }
 0x1e5   :  { %v223_v26 = vpop.xlane.xlu0 %222  ;;  %340 = vlog2.f32 %v173_v27  ;;  %v90_v41 = vmul.f32 0.6931472, %v331_v33 }
 0x1e6   :  { %342 = vlog2.f32 %v165_v22 }
 0x1e7   :  { %344 = vlog2.f32 %v194_v21  ;;  %v91_v52 = vsub.f32 %v88_v45, %v90_v41 }
 0x1e8   :  { %346 = vlog2.f32 %v223_v26  ;;  %v333_v34 = vpop.eup %332 }
 0x1e9   :  { %v231_v29 = vpop.xlane.xlu0 %230  ;;  %v119_v44 = vmul.f32 0.6931472, %v333_v34  ;;  %v93_v61 = vsel %vm92_vm9, %v91_v52, %v64_v58 }
 0x1ea   :  { %348 = vlog2.f32 %v231_v29 }
 0x1ec   :  { %v335_v37 = vpop.eup %334 }
 0x1ed   :  { %v252_v36 = vpop.xlane.xlu0 %251  ;;  %v337_v39 = vpop.eup %336  ;;  %v148_v46 = vmul.f32 0.6931472, %v335_v37 }
 0x1ee   :  { %v339_v42 = vpop.eup %338  ;;  %v117_v49 = vmul.f32 0.6931472, %v337_v39 }
 0x1ef   :  { %v341_v50 = vpop.eup %340  ;;  %v146_v51 = vmul.f32 0.6931472, %v339_v42 }
 0x1f0   :  { %v343_v53 = vpop.eup %342  ;;  %v120_v54 = vsub.f32 %v117_v49, %v119_v44  ;;  %v177_v59 = vmul.f32 0.6931472, %v341_v50 }
 0x1f1   :  { %v345_v55 = vpop.eup %344  ;;  %v149_v56 = vsub.f32 %v146_v51, %v148_v46  ;;  %v175_v63 = vmul.f32 0.6931472, %v343_v53 }
 0x1f2   :  { %v347_v57 = vpop.eup %346  ;;  %v122_v0 = vsel %vm121_vm10, %v120_v54, %v93_v61  ;;  %v204_v1 = vmul.f32 0.6931472, %v345_v55 }
 0x1f3   :  { %v151_v2 = vsel %vm150_vm11, %v149_v56, %v122_v0  ;;  %v178_v5 = vsub.f32 %v175_v63, %v177_v59  ;;  %v233_v6 = vmul.f32 0.6931472, %v347_v57 }
 0x1f4   :  { %v349_v60 = vpop.eup %348 }
 0x1f5   :  { %v235_v7 = vmul.f32 0.6931472, %v349_v60  ;;  %v180_v11 = vsel %vm179_vm12, %v178_v5, %v151_v2 }
 0x1f7   :  { %v236_v15 = vsub.f32 %v233_v6, %v235_v7 }
 0x217   :  { %v202_v35 = vpop.xlane.xlu1 %201 }
 0x218   :  { %350 = vlog2.f32 %v202_v35 }
 0x219   :  { %352 = vlog2.f32 %v252_v36 }
 0x21b   :  { %v260_v47 = vpop.xlane.xlu1 %259 }
 0x21c   :  { %354 = vlog2.f32 %v260_v47 }
 0x222   :  { %v351_v62 = vpop.eup %350 }
 0x223   :  { %v206_v3 = vmul.f32 0.6931472, %v351_v62  ;;  %v353_v4 = vpop.eup %352 }
 0x224   :  { %v262_v13 = vmul.f32 0.6931472, %v353_v4 }
 0x225   :  { %v207_v8 = vsub.f32 %v204_v1, %v206_v3 }
 0x226   :  { %v355_v10 = vpop.eup %354 }
 0x227   :  { %v209_v12 = vsel %vm208_vm13, %v207_v8, %v180_v11  ;;  %v264_v14 = vmul.f32 0.6931472, %v355_v10 }
 0x228   :  { %v238_v17 = vsel %vm237_vm14, %v236_v15, %v209_v12 }
 0x229   :  { %v265_v16 = vsub.f32 %v262_v13, %v264_v14 }
 0x22b   :  { %v267_v18 = vsel %vm266_vm15, %v265_v16, %v238_v17 }
 0x22c   :  { %v276_v19 = vsel %vm273_vm0, %v267_v18, 0.0 }
 0x22d   :  { %278 = vst.msk [vmem:[#allocation7] sm:$0xff] %vm277_vm1, %v276_v19 }
 0x22e   :  { %283 = vsyncadd [#allocation4], 64  ;;  %s438_s13 = smov [#allocation7]  }
 0x22f   :  { %s284_s14 = sshll.u32 %s438_s13, 4  ;;  %s285_s14 = int_to_ptr.vmem [resolvable:$true] %s284_s14 }
 0x230   :  { %s400_s15 = scalar_lea.vmem %s285_s14, 64  ;;  %s404_s16 = scalar_lea.vmem %s285_s14, 128 }
 0x231   :  { %p401_p2 = scmp.ne.s32.totalorder %s285_s14, %s400_s15  ;;  %p405_p3 = scmp.lt.s32.totalorder %s285_s14, %s285_s14 }
 0x232   :  { %p406_p4 = scmp.lt.s32.totalorder %s404_s16, %s400_s15 }
 0x234   :  { %p407_p5 = por %p406_p4, %p405_p3 }
 0x236   :  { %p408_p6 = pnand %p407_p5, %p401_p2 }
 0x238   :  { %411 = shalt.err (!%p408_p6)
}
 0x239   :  { %s412_s19 = scalar_lea.hbm %s538_s2, 64 }
 0x23a   :  { %p413_p7 = scmp.ne.s32.totalorder %s538_s2, %s412_s19  ;;  %p416_p8 = scmp.lt.u32.totalorder %s412_s19, %s538_s2 }
 0x23c   :  { %p418_p9 = pnand %p416_p8, %p413_p7 }
 0x23e   :  { %421 = shalt.err (!%p418_p9)
}
 0x23f   :  { %290 = dma.vmem_to_hbm [thread:$0]  %s285_s14, 64, %s538_s2, [#allocation4], %s429_s20, %s429_s20, %s430_s21  }
 0x240   :  { %426 = dma.done.wait [#allocation4], 128  }
 0x241   :  { %427 = vsyncadd [#allocation4], 4294967168 }
 0x242   :  { %294 = vsyncpa [#allocation3], 1 }
 0x243   :  { %295 = vsyncpa [#allocation6], 1 }
 0x244   :  { %296 = vsyncpa [#allocation4], 1 }

</bundles_post_ra>
